<compile_context>
chip_gen: v6e
topology: v6e:2x2x1
jax: 0.10.0
libtpu: 0.0.40
codegen_flags: <defaults>
</compile_context>

<pallas_src>
import functools
import math

import jax
import jax.numpy as jnp
from jax.experimental import pallas as pl
from jax.experimental.pallas import tpu as pltpu

EPSILON_STD = 0.25
BN_EPS = 0.001
SELU_ALPHA = 1.6732632423543772
SELU_SCALE = 1.0507009873554804
_NEG_BIG = -1e30


def _round_up(n, m):
    return ((n + m - 1) // m) * m


# --------------------------------------------------------------------------
# Kernels
# --------------------------------------------------------------------------

def bn_stats_kernel(x_ref, w_enc_ref, gb_ref, ss_ref, acc_ref, *,
                    batch_true, im_pad):
    """Pass 1: full-batch BatchNorm stats, folded into (scale, shift).

    Batch-tiled grid ("arbitrary"); column sums of h and h*h are computed on the
    MXU (ones(1,tb) @ [h | h*h]) and accumulated in a VMEM scratch; the folded
    BN affine is written on the last step. Encoder bias is dropped on purpose:
    training-mode BN subtracts the batch mean, which cancels it exactly; this
    also makes zero-padded batch rows contribute exactly 0 to both sums, so
    dividing by the true batch size keeps full-batch statistics exact.
    """
    i = pl.program_id(0)

    @pl.when(i == 0)
    def _():
        acc_ref[...] = jnp.zeros_like(acc_ref)

    h = jnp.dot(x_ref[...].astype(jnp.bfloat16), w_enc_ref[...],
                preferred_element_type=jnp.float32)               # (tb, im_pad) f32
    hh = jnp.concatenate([h, h * h], axis=1)                       # (tb, 2*im_pad)
    ones = jnp.ones((1, h.shape[0]), jnp.float32)
    acc_ref[...] += jnp.dot(ones, hh, preferred_element_type=jnp.float32)

    @pl.when(i == pl.num_programs(0) - 1)
    def _():
        inv_n = jnp.float32(1.0 / batch_true)
        mean = acc_ref[:, :im_pad] * inv_n
        # biased batch variance (E[h^2] - E[h]^2), clamped for f32 cancellation
        bvar = jnp.maximum(acc_ref[:, im_pad:] * inv_n - mean * mean, 0.0)
        scale = gb_ref[0:1, :] * jax.lax.rsqrt(bvar + BN_EPS)
        shift = gb_ref[1:2, :] - mean * scale
        ss_ref[...] = jnp.concatenate([scale, shift], axis=0)


def sba_main_kernel(x_ref, w_enc_ref, w_head_ref, w_se_ref, w_d_ref,
                    bias_ref, eps_ref, ss_ref, out_ref, *,
                    lat_dim, lat_pad, im_pad, orig_pad):
    """Pass 2 (per batch tile, 'parallel'): normalize, heads, sample, decode."""
    # encoder matmul: f32 x cast to bf16 on the VPU (hidden under the matmul)
    h = jnp.dot(x_ref[...].astype(jnp.bfloat16), w_enc_ref[...],
                preferred_element_type=jnp.float32)                # (tb, im_pad)

    # folded BatchNorm affine: one FMA per element
    im = h * ss_ref[0:1, :] + ss_ref[1:2, :]

    # fused mu|var head: one (tb, 2*lat_pad) matmul
    head = jnp.dot(im.astype(jnp.bfloat16), w_head_ref[...],
                   preferred_element_type=jnp.float32) + bias_ref[:, :2 * lat_pad]
    mu = head[:, :lat_pad]
    logits = head[:, lat_pad:]

    # mask padded latent columns so softmax over the padded width is exact
    if lat_pad != lat_dim:
        lane = jax.lax.broadcasted_iota(jnp.int32, logits.shape, 1)
        logits = jnp.where(lane < lat_dim, logits, _NEG_BIG)

    m = jnp.max(logits, axis=1, keepdims=True)
    e = jnp.exp(logits - m)
    var = e / jnp.sum(e, axis=1, keepdims=True)     # exact softmax (torch parity)

    std = jnp.sqrt(var)
    eps0 = eps_ref[:, :lat_pad]                     # epsilon_std already folded in
    eps1 = eps_ref[:, lat_pad:]

    # two stochastic decode branches: stacked per-branch weights (no blockdiag,
    # no zero MACs); 2-iteration unrolled Python loop.
    # TODO(synk): on v6e/v7x the SELU exp could run in bf16 (2x EUP rate); kept
    # f32 for v5e compatibility and numeric parity.
    off = 2 * lat_pad
    decs = []
    for b in range(2):
        z = (mu + std * (eps0 if b == 0 else eps1)).astype(jnp.bfloat16)
        b_se = bias_ref[:, off + b * im_pad: off + (b + 1) * im_pad]
        pre = jnp.dot(z, w_se_ref[b], preferred_element_type=jnp.float32) + b_se
        hdec = SELU_SCALE * jnp.where(pre > 0, pre, SELU_ALPHA * (jnp.exp(pre) - 1.0))
        b_d = bias_ref[:, off + 2 * im_pad + b * orig_pad:
                       off + 2 * im_pad + (b + 1) * orig_pad]
        decs.append(jnp.dot(hdec.astype(jnp.bfloat16), w_d_ref[b],
                            preferred_element_type=jnp.float32) + b_d)

    # single lane-dense packed output: [mu | var | dec0 | dec1], all 128-aligned
    out_ref[...] = jnp.concatenate([mu, var] + decs, axis=1)


# --------------------------------------------------------------------------
# Parameter init / one-time fusion (hoisted out of the per-call forward)
# --------------------------------------------------------------------------

def xavier_uniform(key, fan_in, fan_out):
    bound = math.sqrt(6.0 / (fan_in + fan_out))
    return jax.random.uniform(key, (fan_in, fan_out), jnp.float32, -bound, bound)


def init_params(key, original_dim, im_dim, lat_dim):
    ks = jax.random.split(key, 7)
    return {
        "w_enc": xavier_uniform(ks[0], original_dim, im_dim),
        # encoder bias omitted: zero-init AND mathematically dead under training-mode BN
        "gamma": jnp.ones((1, im_dim), jnp.float32),
        "beta": jnp.zeros((1, im_dim), jnp.float32),
        "w_mu": xavier_uniform(ks[1], im_dim, lat_dim),
        "b_mu": jnp.zeros((1, lat_dim), jnp.float32),
        "w_var": xavier_uniform(ks[2], im_dim, lat_dim),
        "b_var": jnp.zeros((1, lat_dim), jnp.float32),
        "w_se0": xavier_uniform(ks[3], lat_dim, im_dim),
        "b_se0": jnp.zeros((1, im_dim), jnp.float32),
        "w_se1": xavier_uniform(ks[4], lat_dim, im_dim),
        "b_se1": jnp.zeros((1, im_dim), jnp.float32),
        "w_d0": xavier_uniform(ks[5], im_dim, original_dim),
        "b_d0": jnp.zeros((1, original_dim), jnp.float32),
        "w_d1": xavier_uniform(ks[6], im_dim, original_dim),
        "b_d1": jnp.zeros((1, original_dim), jnp.float32),
    }


def prepare_fused_params(params):
    """One-time weight padding / fusion / bf16 cast (call once, reuse per forward)."""
    original_dim, im_dim = params["w_enc"].shape
    lat_dim = params["w_mu"].shape[1]
    im_pad = _round_up(im_dim, 128)
    lat_pad = _round_up(lat_dim, 128)
    orig_pad = _round_up(original_dim, 128)

    def pad2(a, r, c):
        return jnp.pad(a, ((0, r - a.shape[0]), (0, c - a.shape[1])))

    bf16 = jnp.bfloat16
    return {
        "w_enc": pad2(params["w_enc"], original_dim, im_pad).astype(bf16),
        "gb": jnp.concatenate([pad2(params["gamma"], 1, im_pad),
                               pad2(params["beta"], 1, im_pad)], axis=0),
        "w_head": jnp.concatenate([pad2(params["w_mu"], im_pad, lat_pad),
                                   pad2(params["w_var"], im_pad, lat_pad)],
                                  axis=1).astype(bf16),
        "w_se": jnp.stack([pad2(params["w_se0"], lat_pad, im_pad),
                           pad2(params["w_se1"], lat_pad, im_pad)]).astype(bf16),
        "w_d": jnp.stack([pad2(params["w_d0"], im_pad, orig_pad),
                          pad2(params["w_d1"], im_pad, orig_pad)]).astype(bf16),
        # all bias row-vectors packed into ONE lane-dense (1, P) input
        "bias": jnp.concatenate(
            [pad2(params["b_mu"], 1, lat_pad), pad2(params["b_var"], 1, lat_pad),
             pad2(params["b_se0"], 1, im_pad), pad2(params["b_se1"], 1, im_pad),
             pad2(params["b_d0"], 1, orig_pad), pad2(params["b_d1"], 1, orig_pad)],
            axis=1),
    }


# --------------------------------------------------------------------------
# Forward wrapper
# --------------------------------------------------------------------------

def _vmem_budget():
    try:
        info = pltpu.get_tpu_info()
        cap = int(getattr(info, "vmem_capacity_bytes", 64 * 1024 * 1024))
    except Exception:
        cap = 64 * 1024 * 1024          # conservative (v7x-sized) fallback
    limit = min(100 * 1024 * 1024, int(cap * 0.9))
    return limit, cap


def _pick_tile_b(B, orig, im_pad, lat_pad, orig_pad, out_w, vmem_cap):
    # f32 bytes per batch row live in VMEM (x tile, h/im, head/softmax temps,
    # per-branch hdec/dec, packed out tile; x2 fudge for double-buffered blocks)
    row_bytes = 4 * (2 * orig + 6 * im_pad + 8 * lat_pad + 2 * orig_pad + 2 * out_w)
    budget = int(vmem_cap * 0.45)       # headroom for weights & compiler scratch
    t = max(8, min(512, budget // max(row_bytes, 1)))
    t = (t // 8) * 8
    t = min(t, _round_up(B, 8))
    return max(t, 8)


def stacked_bayesian_autoencoder_forward(x, fused, eps0, eps1):
    B, original_dim = x.shape
    lat_dim = eps0.shape[1]
    im_pad = fused["w_enc"].shape[1]
    lat_pad = fused["w_head"].shape[1] // 2
    orig_pad = fused["w_d"].shape[2]
    out_w = 2 * lat_pad + 2 * orig_pad
    bias_w = fused["bias"].shape[1]

    vmem_limit, vmem_cap = _vmem_budget()
    tile_b = _pick_tile_b(B, original_dim, im_pad, lat_pad, orig_pad, out_w, vmem_cap)
    B_pad = _round_up(B, tile_b)
    if B_pad != B:
        x = jnp.pad(x, ((0, B_pad - B), (0, 0)))
    n_tiles = B_pad // tile_b

    # per-call randomness: fold epsilon_std, pack eps0|eps1 into one lane-dense row
    eps_pack = jnp.zeros((1, 2 * lat_pad), jnp.float32)
    eps_pack = eps_pack.at[:, :lat_dim].set(eps0 * EPSILON_STD)
    eps_pack = eps_pack.at[:, lat_pad:lat_pad + lat_dim].set(eps1 * EPSILON_STD)

    full2 = lambda i: (0, 0)
    full3 = lambda i: (0, 0, 0)

    # ---- pass 1: full-batch BN statistics -> folded (scale, shift) ----------
    # TODO(synk): on v7x, shard this pass across both TensorCores with a
    # CMEM/VMEM_SHARED partial-sum combine; it is a tiny fraction of runtime.
    ss = pl.pallas_call(
        functools.partial(bn_stats_kernel, batch_true=B, im_pad=im_pad),
        out_shape=jax.ShapeDtypeStruct((2, im_pad), jnp.float32),
        grid=(n_tiles,),
        in_specs=[pl.BlockSpec((tile_b, original_dim), lambda i: (i, 0)),
                  pl.BlockSpec((original_dim, im_pad), full2),
                  pl.BlockSpec((2, im_pad), full2)],
        out_specs=pl.BlockSpec((2, im_pad), full2),
        scratch_shapes=[pltpu.VMEM((1, 2 * im_pad), jnp.float32)],
        compiler_params=pltpu.CompilerParams(
            dimension_semantics=("arbitrary",),
            vmem_limit_bytes=vmem_limit),
    )(x, fused["w_enc"], fused["gb"])

    # ---- pass 2: batch-tiled, pipelined normalize / heads / sample / decode --
    weight_elems = (original_dim * im_pad + im_pad * 2 * lat_pad
                    + 2 * lat_pad * im_pad + 2 * im_pad * orig_pad)
    cost = pl.CostEstimate(
        flops=2 * B_pad * weight_elems,
        transcendentals=B_pad * (lat_pad + 2 * im_pad),
        bytes_accessed=4 * B_pad * (original_dim + out_w) + 2 * weight_elems)

    packed = pl.pallas_call(
        functools.partial(sba_main_kernel, lat_dim=lat_dim, lat_pad=lat_pad,
                          im_pad=im_pad, orig_pad=orig_pad),
        out_shape=jax.ShapeDtypeStruct((B_pad, out_w), jnp.float32),
        grid=(n_tiles,),
        in_specs=[pl.BlockSpec((tile_b, original_dim), lambda i: (i, 0)),
                  pl.BlockSpec((original_dim, im_pad), full2),
                  pl.BlockSpec((im_pad, 2 * lat_pad), full2),
                  pl.BlockSpec((2, lat_pad, im_pad), full3),
                  pl.BlockSpec((2, im_pad, orig_pad), full3),
                  pl.BlockSpec((1, bias_w), full2),
                  pl.BlockSpec((1, 2 * lat_pad), full2),
                  pl.BlockSpec((2, im_pad), full2)],
        out_specs=pl.BlockSpec((tile_b, out_w), lambda i: (i, 0)),
        compiler_params=pltpu.CompilerParams(
            dimension_semantics=("parallel",),
            vmem_limit_bytes=vmem_limit),
        cost_estimate=cost,
    )(x, fused["w_enc"], fused["w_head"], fused["w_se"], fused["w_d"],
      fused["bias"], eps_pack, ss)

    # unpack [mu | var | dec0 | dec1] at lane-aligned offsets in the wrapper
    mu = packed[:B, :lat_dim]
    var = packed[:B, lat_pad:lat_pad + lat_dim]
    dec0 = packed[:B, 2 * lat_pad:2 * lat_pad + original_dim]
    dec1 = packed[:B, 2 * lat_pad + orig_pad:2 * lat_pad + orig_pad + original_dim]
    return mu, var, dec0, dec1


# --------------------------------------------------------------------------
# Pure-JAX f32 reference (PyTorch semantics) for a loose numeric check
# --------------------------------------------------------------------------

def reference_forward(x, params, eps0, eps1):
    h = x @ params["w_enc"]
    mean = jnp.mean(h, axis=0, keepdims=True)
    bvar = jnp.mean((h - mean) ** 2, axis=0, keepdims=True)
    im = (h - mean) * jax.lax.rsqrt(bvar + BN_EPS) * params["gamma"] + params["beta"]
    mu = im @ params["w_mu"] + params["b_mu"]
    var = jax.nn.softmax(im @ params["w_var"] + params["b_var"], axis=1)
    outs = [mu, var]
    for wse, bse, wd, bd, eps in (
            (params["w_se0"], params["b_se0"], params["w_d0"], params["b_d0"], eps0),
            (params["w_se1"], params["b_se1"], params["w_d1"], params["b_d1"], eps1)):
        z = mu + jnp.sqrt(var) * EPSILON_STD * eps
        outs.append(jax.nn.selu(z @ wse + bse) @ wd + bd)
    return outs


if __name__ == "__main__":
    # small shapes consistent with the module: x is (batch, original_dim)
    B, ORIGINAL_DIM, IM_DIM, LAT_DIM = 8, 32, 64, 16

    key = jax.random.PRNGKey(0)
    k_x, k_p, k_e0, k_e1 = jax.random.split(key, 4)

    x = jax.random.normal(k_x, (B, ORIGINAL_DIM), jnp.float32)
    params = init_params(k_p, ORIGINAL_DIM, IM_DIM, LAT_DIM)
    # torch.randn((1, lat_dim)) equivalents, drawn deterministically outside the kernel
    eps0 = jax.random.normal(k_e0, (1, LAT_DIM), jnp.float32)
    eps1 = jax.random.normal(k_e1, (1, LAT_DIM), jnp.float32)

    fused = prepare_fused_params(params)           # hoisted: done once, reused per call
    fwd = jax.jit(stacked_bayesian_autoencoder_forward)

    mu, var, dec0, dec1 = fwd(x, fused, eps0, eps1)
    jax.block_until_ready((mu, var, dec0, dec1))

    assert mu.shape == (B, LAT_DIM)
    assert var.shape == (B, LAT_DIM)
    assert dec0.shape == (B, ORIGINAL_DIM)
    assert dec1.shape == (B, ORIGINAL_DIM)
    # exact softmax: rows sum to 1
    assert bool(jnp.allclose(jnp.sum(var, axis=1), 1.0, atol=1e-4))

    r_mu, r_var, r_d0, r_d1 = reference_forward(x, params, eps0, eps1)
    for got, ref in ((mu, r_mu), (var, r_var), (dec0, r_d0), (dec1, r_d1)):
        assert bool(jnp.all(jnp.isfinite(got)))
        # bf16 MXU operands vs f32 reference -> loose tolerance
        assert bool(jnp.allclose(got, ref, atol=5e-2, rtol=5e-2))

    print("KERNEL_OK")
</pallas_src>

<mosaic_0001>
module attributes {stable_mosaic.version = 11 : i64} {
  func.func @bn_stats_kernel(%arg0: i32, %arg1: memref<8x32xf32, #tpu.memory_space<vmem>>, %arg2: memref<32x128xbf16, #tpu.memory_space<vmem>>, %arg3: memref<2x128xf32, #tpu.memory_space<vmem>>, %arg4: memref<2x128xf32, #tpu.memory_space<vmem>>, %arg5: memref<1x256xf32, #tpu.memory_space<vmem>>) attributes {dimension_semantics = [#tpu.dimension_semantics<arbitrary>], iteration_bounds = array<i64: 1>, scalar_prefetch = 0 : i64, scratch_operands = 1 : i64, tpu.core_type = #tpu.core_type<tc>, window_params = [{transform_indices = @transform_0, window_bounds = array<i64: 8, 32>}, {pipeline_mode = #tpu.pipeline_mode<synchronous>, transform_indices = @transform_1, window_bounds = array<i64: 32, 128>}, {pipeline_mode = #tpu.pipeline_mode<synchronous>, transform_indices = @transform_2, window_bounds = array<i64: 2, 128>}, {pipeline_mode = #tpu.pipeline_mode<synchronous>, transform_indices = @transform_3, window_bounds = array<i64: 2, 128>}]} {
    %c0_i32 = arith.constant 0 : i32
    %0 = arith.cmpi eq, %arg0, %c0_i32 : i32
    %1 = arith.extui %0 : i1 to i32
    %c0_i32_0 = arith.constant 0 : i32
    %2 = arith.cmpi ne, %1, %c0_i32_0 : i32
    scf.if %2 {
      %cst_12 = arith.constant 0.000000e+00 : f32
      %17 = vector.broadcast %cst_12 : f32 to vector<1x256xf32>
      %c0_13 = arith.constant 0 : index
      %c0_14 = arith.constant 0 : index
      %18 = vector.load %arg5[%c0_13, %c0_14] : memref<1x256xf32, #tpu.memory_space<vmem>>, vector<1x256xf32>
      tpu.vector_store %arg5[%c0_13, %c0_14], %17 {strides = array<i32>} : memref<1x256xf32, #tpu.memory_space<vmem>>, vector<1x256xf32>,
    } else {
    }
    %c0 = arith.constant 0 : index
    %c0_1 = arith.constant 0 : index
    %3 = vector.load %arg1[%c0, %c0_1] : memref<8x32xf32, #tpu.memory_space<vmem>>, vector<8x32xf32>
    %4 = arith.truncf %3 : vector<8x32xf32> to vector<8x32xbf16>
    %c0_2 = arith.constant 0 : index
    %c0_3 = arith.constant 0 : index
    %5 = vector.load %arg2[%c0_2, %c0_3] : memref<32x128xbf16, #tpu.memory_space<vmem>>, vector<32x128xbf16>
    %cst = arith.constant dense<0.000000e+00> : vector<8x128xf32>
    %6 = tpu.matmul %4, %5, %cst {dimension_numbers = #tpu.dot_dimension_numbers<[1], [0], [0], [1], [0, 0, 1, 1], [], []>} : vector<8x32xbf16>, vector<32x128xbf16>, vector<8x128xf32> -> vector<8x128xf32>
    %7 = arith.mulf %6, %6 : vector<8x128xf32>
    %8 = tpu.concatenate %6, %7 in 1 : vector<8x128xf32>, vector<8x128xf32> -> vector<8x256xf32>
    %cst_4 = arith.constant 1.000000e+00 : f32
    %9 = vector.broadcast %cst_4 : f32 to vector<1x8xf32>
    %c0_5 = arith.constant 0 : index
    %c0_6 = arith.constant 0 : index
    %10 = vector.load %arg5[%c0_5, %c0_6] : memref<1x256xf32, #tpu.memory_space<vmem>>, vector<1x256xf32>
    %cst_7 = arith.constant dense<0.000000e+00> : vector<1x256xf32>
    %11 = tpu.matmul %9, %8, %cst_7 {dimension_numbers = #tpu.dot_dimension_numbers<[1], [0], [0], [1], [0, 0, 1, 1], [], []>} : vector<1x8xf32>, vector<8x256xf32>, vector<1x256xf32> -> vector<1x256xf32>
    %12 = arith.addf %10, %11 : vector<1x256xf32>
    %c0_8 = arith.constant 0 : index
    %c0_9 = arith.constant 0 : index
    %13 = vector.load %arg5[%c0_8, %c0_9] : memref<1x256xf32, #tpu.memory_space<vmem>>, vector<1x256xf32>
    tpu.vector_store %arg5[%c0_8, %c0_9], %12 {strides = array<i32>} : memref<1x256xf32, #tpu.memory_space<vmem>>, vector<1x256xf32>,
    %c0_i32_10 = arith.constant 0 : i32
    %14 = arith.cmpi eq, %arg0, %c0_i32_10 : i32
    %15 = arith.extui %14 : i1 to i32
    %c0_i32_11 = arith.constant 0 : i32
    %16 = arith.cmpi ne, %15, %c0_i32_11 : i32
    scf.if %16 {
      %c0_12 = arith.constant 0 : index
      %c0_13 = arith.constant 0 : index
      %17 = vector.load %arg5[%c0_12, %c0_13] : memref<1x256xf32, #tpu.memory_space<vmem>>, vector<1x128xf32>
      %cst_14 = arith.constant 1.250000e-01 : f32
      %18 = vector.broadcast %cst_14 : f32 to vector<1x128xf32>
      %19 = arith.mulf %17, %18 : vector<1x128xf32>
      %c0_15 = arith.constant 0 : index
      %c128 = arith.constant 128 : index
      %20 = vector.load %arg5[%c0_15, %c128] : memref<1x256xf32, #tpu.memory_space<vmem>>, vector<1x128xf32>
      %cst_16 = arith.constant 1.250000e-01 : f32
      %21 = vector.broadcast %cst_16 : f32 to vector<1x128xf32>
      %22 = arith.mulf %20, %21 : vector<1x128xf32>
      %23 = arith.mulf %19, %19 : vector<1x128xf32>
      %24 = arith.subf %22, %23 : vector<1x128xf32>
      %cst_17 = arith.constant 0.000000e+00 : f32
      %25 = vector.broadcast %cst_17 : f32 to vector<1x128xf32>
      %26 = arith.maximumf %24, %25 : vector<1x128xf32>
      %c0_18 = arith.constant 0 : index
      %c0_19 = arith.constant 0 : index
      %27 = vector.load %arg3[%c0_18, %c0_19] : memref<2x128xf32, #tpu.memory_space<vmem>>, vector<1x128xf32>
      %cst_20 = arith.constant 1.000000e-03 : f32
      %28 = vector.broadcast %cst_20 : f32 to vector<1x128xf32>
      %29 = arith.addf %26, %28 : vector<1x128xf32>
      %30 = math.rsqrt %29 : vector<1x128xf32>
      %31 = arith.mulf %27, %30 : vector<1x128xf32>
      %c1 = arith.constant 1 : index
      %c0_21 = arith.constant 0 : index
      %32 = vector.load %arg3[%c1, %c0_21] : memref<2x128xf32, #tpu.memory_space<vmem>>, vector<1x128xf32>
      %33 = arith.mulf %19, %31 : vector<1x128xf32>
      %34 = arith.subf %32, %33 : vector<1x128xf32>
      %35 = tpu.concatenate %31, %34 in 0 : vector<1x128xf32>, vector<1x128xf32> -> vector<2x128xf32>
      %c0_22 = arith.constant 0 : index
      %c0_23 = arith.constant 0 : index
      %36 = vector.load %arg4[%c0_22, %c0_23] : memref<2x128xf32, #tpu.memory_space<vmem>>, vector<2x128xf32>
      tpu.vector_store %arg4[%c0_22, %c0_23], %35 {strides = array<i32>} : memref<2x128xf32, #tpu.memory_space<vmem>>, vector<2x128xf32>,
    } else {
    }
    return
  }
  func.func @transform_0(%arg0: i32) -> (i32, i32) {
    %c0_i32 = arith.constant 0 : i32
    %c0_i32_0 = arith.constant 0 : i32
    return %arg0, %c0_i32 : i32, i32
  }
  func.func @transform_1(%arg0: i32) -> (i32, i32) {
    %c0_i32 = arith.constant 0 : i32
    %c0_i32_0 = arith.constant 0 : i32
    %c0_i32_1 = arith.constant 0 : i32
    return %c0_i32, %c0_i32_0 : i32, i32
  }
  func.func @transform_2(%arg0: i32) -> (i32, i32) {
    %c0_i32 = arith.constant 0 : i32
    %c0_i32_0 = arith.constant 0 : i32
    %c0_i32_1 = arith.constant 0 : i32
    return %c0_i32, %c0_i32_0 : i32, i32
  }
  func.func @transform_3(%arg0: i32) -> (i32, i32) {
    %c0_i32 = arith.constant 0 : i32
    %c0_i32_0 = arith.constant 0 : i32
    %c0_i32_1 = arith.constant 0 : i32
    return %c0_i32, %c0_i32_0 : i32, i32
  }
}

module attributes {stable_mosaic.version = 11 : i64} {
  func.func @sba_main_kernel(%arg0: i32, %arg1: memref<8x32xf32, #tpu.memory_space<vmem>>, %arg2: memref<32x128xbf16, #tpu.memory_space<vmem>>, %arg3: memref<128x256xbf16, #tpu.memory_space<vmem>>, %arg4: memref<2x128x128xbf16, #tpu.memory_space<vmem>>, %arg5: memref<2x128x128xbf16, #tpu.memory_space<vmem>>, %arg6: memref<1x768xf32, #tpu.memory_space<vmem>>, %arg7: memref<1x256xf32, #tpu.memory_space<vmem>>, %arg8: memref<2x128xf32, #tpu.memory_space<vmem>>, %arg9: memref<8x512xf32, #tpu.memory_space<vmem>>) attributes {dimension_semantics = [#tpu.dimension_semantics<parallel>], iteration_bounds = array<i64: 1>, scalar_prefetch = 0 : i64, scratch_operands = 0 : i64, tpu.core_type = #tpu.core_type<tc>, window_params = [{transform_indices = @transform_0, window_bounds = array<i64: 8, 32>}, {pipeline_mode = #tpu.pipeline_mode<synchronous>, transform_indices = @transform_1, window_bounds = array<i64: 32, 128>}, {pipeline_mode = #tpu.pipeline_mode<synchronous>, transform_indices = @transform_2, window_bounds = array<i64: 128, 256>}, {pipeline_mode = #tpu.pipeline_mode<synchronous>, transform_indices = @transform_3, window_bounds = array<i64: 2, 128, 128>}, {pipeline_mode = #tpu.pipeline_mode<synchronous>, transform_indices = @transform_4, window_bounds = array<i64: 2, 128, 128>}, {pipeline_mode = #tpu.pipeline_mode<synchronous>, transform_indices = @transform_5, window_bounds = array<i64: 1, 768>}, {pipeline_mode = #tpu.pipeline_mode<synchronous>, transform_indices = @transform_6, window_bounds = array<i64: 1, 256>}, {pipeline_mode = #tpu.pipeline_mode<synchronous>, transform_indices = @transform_7, window_bounds = array<i64: 2, 128>}, {transform_indices = @transform_8, window_bounds = array<i64: 8, 512>}]} {
    %c0 = arith.constant 0 : index
    %c0_0 = arith.constant 0 : index
    %0 = vector.load %arg1[%c0, %c0_0] : memref<8x32xf32, #tpu.memory_space<vmem>>, vector<8x32xf32>
    %1 = arith.truncf %0 : vector<8x32xf32> to vector<8x32xbf16>
    %c0_1 = arith.constant 0 : index
    %c0_2 = arith.constant 0 : index
    %2 = vector.load %arg2[%c0_1, %c0_2] : memref<32x128xbf16, #tpu.memory_space<vmem>>, vector<32x128xbf16>
    %cst = arith.constant dense<0.000000e+00> : vector<8x128xf32>
    %3 = tpu.matmul %1, %2, %cst {dimension_numbers = #tpu.dot_dimension_numbers<[1], [0], [0], [1], [0, 0, 1, 1], [], []>} : vector<8x32xbf16>, vector<32x128xbf16>, vector<8x128xf32> -> vector<8x128xf32>
    %c0_3 = arith.constant 0 : index
    %c0_4 = arith.constant 0 : index
    %4 = vector.load %arg8[%c0_3, %c0_4] : memref<2x128xf32, #tpu.memory_space<vmem>>, vector<1x128xf32>
    %5 = vector.broadcast %4 : vector<1x128xf32> to vector<8x128xf32>
    %6 = arith.mulf %3, %5 : vector<8x128xf32>
    %c1 = arith.constant 1 : index
    %c0_5 = arith.constant 0 : index
    %7 = vector.load %arg8[%c1, %c0_5] : memref<2x128xf32, #tpu.memory_space<vmem>>, vector<1x128xf32>
    %8 = vector.broadcast %7 : vector<1x128xf32> to vector<8x128xf32>
    %9 = arith.addf %6, %8 : vector<8x128xf32>
    %10 = arith.truncf %9 : vector<8x128xf32> to vector<8x128xbf16>
    %c0_6 = arith.constant 0 : index
    %c0_7 = arith.constant 0 : index
    %11 = vector.load %arg3[%c0_6, %c0_7] : memref<128x256xbf16, #tpu.memory_space<vmem>>, vector<128x256xbf16>
    %cst_8 = arith.constant dense<0.000000e+00> : vector<8x256xf32>
    %12 = tpu.matmul %10, %11, %cst_8 {dimension_numbers = #tpu.dot_dimension_numbers<[1], [0], [0], [1], [0, 0, 1, 1], [], []>} : vector<8x128xbf16>, vector<128x256xbf16>, vector<8x256xf32> -> vector<8x256xf32>
    %c0_9 = arith.constant 0 : index
    %c0_10 = arith.constant 0 : index
    %13 = vector.load %arg6[%c0_9, %c0_10] : memref<1x768xf32, #tpu.memory_space<vmem>>, vector<1x256xf32>
    %14 = vector.broadcast %13 : vector<1x256xf32> to vector<8x256xf32>
    %15 = arith.addf %12, %14 : vector<8x256xf32>
    %16 = vector.extract_strided_slice %15 {offsets = [0, 0], sizes = [8, 128], strides = [1, 1]} : vector<8x256xf32> to vector<8x128xf32>
    %17 = vector.extract_strided_slice %15 {offsets = [0, 128], sizes = [8, 128], strides = [1, 1]} : vector<8x256xf32> to vector<8x128xf32>
    %18 = tpu.iota {dimensions = array<i32: 1>} : vector<8x128xi32>
    %c16_i32 = arith.constant 16 : i32
    %19 = vector.broadcast %c16_i32 : i32 to vector<8x128xi32>
    %20 = arith.cmpi slt, %18, %19 : vector<8x128xi32>
    %cst_11 = arith.constant -1.000000e+30 : f32
    %21 = vector.broadcast %cst_11 : f32 to vector<8x128xf32>
    %22 = arith.select %20, %17, %21 : vector<8x128xi1>, vector<8x128xf32>
    %cst_12 = arith.constant dense<0xFF800000> : vector<8xf32>
    %23 = vector.multi_reduction <maximumf>, %22, %cst_12 [1] : vector<8x128xf32> to vector<8xf32>
    %24 = vector.shape_cast %23 : vector<8xf32> to vector<8x1xf32>
    %25 = vector.broadcast %24 : vector<8x1xf32> to vector<8x128xf32>
    %26 = arith.subf %22, %25 : vector<8x128xf32>
    %27 = math.exp %26 : vector<8x128xf32>
    %cst_13 = arith.constant dense<0.000000e+00> : vector<8xf32>
    %28 = vector.multi_reduction <add>, %27, %cst_13 [1] : vector<8x128xf32> to vector<8xf32>
    %29 = vector.shape_cast %28 : vector<8xf32> to vector<8x1xf32>
    %30 = vector.broadcast %29 : vector<8x1xf32> to vector<8x128xf32>
    %31 = arith.divf %27, %30 : vector<8x128xf32>
    %32 = math.sqrt %31 : vector<8x128xf32>
    %c0_14 = arith.constant 0 : index
    %c0_15 = arith.constant 0 : index
    %33 = vector.load %arg7[%c0_14, %c0_15] : memref<1x256xf32, #tpu.memory_space<vmem>>, vector<1x128xf32>
    %c0_16 = arith.constant 0 : index
    %c128 = arith.constant 128 : index
    %34 = vector.load %arg7[%c0_16, %c128] : memref<1x256xf32, #tpu.memory_space<vmem>>, vector<1x128xf32>
    %35 = vector.broadcast %33 : vector<1x128xf32> to vector<8x128xf32>
    %36 = arith.mulf %32, %35 : vector<8x128xf32>
    %37 = arith.addf %16, %36 : vector<8x128xf32>
    %38 = arith.truncf %37 : vector<8x128xf32> to vector<8x128xbf16>
    %c0_17 = arith.constant 0 : index
    %c256 = arith.constant 256 : index
    %39 = vector.load %arg6[%c0_17, %c256] : memref<1x768xf32, #tpu.memory_space<vmem>>, vector<1x128xf32>
    %c0_18 = arith.constant 0 : index
    %c0_19 = arith.constant 0 : index
    %c0_20 = arith.constant 0 : index
    %40 = vector.load %arg4[%c0_18, %c0_19, %c0_20] : memref<2x128x128xbf16, #tpu.memory_space<vmem>>, vector<1x128x128xbf16>
    %41 = vector.shape_cast %40 : vector<1x128x128xbf16> to vector<128x128xbf16>
    %cst_21 = arith.constant dense<0.000000e+00> : vector<8x128xf32>
    %42 = tpu.matmul %38, %41, %cst_21 {dimension_numbers = #tpu.dot_dimension_numbers<[1], [0], [0], [1], [0, 0, 1, 1], [], []>} : vector<8x128xbf16>, vector<128x128xbf16>, vector<8x128xf32> -> vector<8x128xf32>
    %43 = vector.broadcast %39 : vector<1x128xf32> to vector<8x128xf32>
    %44 = arith.addf %42, %43 : vector<8x128xf32>
    %cst_22 = arith.constant 0.000000e+00 : f32
    %45 = vector.broadcast %cst_22 : f32 to vector<8x128xf32>
    %46 = arith.cmpf ogt, %44, %45 : vector<8x128xf32>
    %47 = math.exp %44 : vector<8x128xf32>
    %cst_23 = arith.constant 1.000000e+00 : f32
    %48 = vector.broadcast %cst_23 : f32 to vector<8x128xf32>
    %49 = arith.subf %47, %48 : vector<8x128xf32>
    %cst_24 = arith.constant 1.67326319 : f32
    %50 = vector.broadcast %cst_24 : f32 to vector<8x128xf32>
    %51 = arith.mulf %50, %49 : vector<8x128xf32>
    %52 = arith.select %46, %44, %51 : vector<8x128xi1>, vector<8x128xf32>
    %cst_25 = arith.constant 1.05070102 : f32
    %53 = vector.broadcast %cst_25 : f32 to vector<8x128xf32>
    %54 = arith.mulf %53, %52 : vector<8x128xf32>
    %c0_26 = arith.constant 0 : index
    %c512 = arith.constant 512 : index
    %55 = vector.load %arg6[%c0_26, %c512] : memref<1x768xf32, #tpu.memory_space<vmem>>, vector<1x128xf32>
    %56 = arith.truncf %54 : vector<8x128xf32> to vector<8x128xbf16>
    %c0_27 = arith.constant 0 : index
    %c0_28 = arith.constant 0 : index
    %c0_29 = arith.constant 0 : index
    %57 = vector.load %arg5[%c0_27, %c0_28, %c0_29] : memref<2x128x128xbf16, #tpu.memory_space<vmem>>, vector<1x128x128xbf16>
    %58 = vector.shape_cast %57 : vector<1x128x128xbf16> to vector<128x128xbf16>
    %cst_30 = arith.constant dense<0.000000e+00> : vector<8x128xf32>
    %59 = tpu.matmul %56, %58, %cst_30 {dimension_numbers = #tpu.dot_dimension_numbers<[1], [0], [0], [1], [0, 0, 1, 1], [], []>} : vector<8x128xbf16>, vector<128x128xbf16>, vector<8x128xf32> -> vector<8x128xf32>
    %60 = vector.broadcast %55 : vector<1x128xf32> to vector<8x128xf32>
    %61 = arith.addf %59, %60 : vector<8x128xf32>
    %62 = vector.broadcast %34 : vector<1x128xf32> to vector<8x128xf32>
    %63 = arith.mulf %32, %62 : vector<8x128xf32>
    %64 = arith.addf %16, %63 : vector<8x128xf32>
    %65 = arith.truncf %64 : vector<8x128xf32> to vector<8x128xbf16>
    %c0_31 = arith.constant 0 : index
    %c384 = arith.constant 384 : index
    %66 = vector.load %arg6[%c0_31, %c384] : memref<1x768xf32, #tpu.memory_space<vmem>>, vector<1x128xf32>
    %c1_32 = arith.constant 1 : index
    %c0_33 = arith.constant 0 : index
    %c0_34 = arith.constant 0 : index
    %67 = vector.load %arg4[%c1_32, %c0_33, %c0_34] : memref<2x128x128xbf16, #tpu.memory_space<vmem>>, vector<1x128x128xbf16>
    %68 = vector.shape_cast %67 : vector<1x128x128xbf16> to vector<128x128xbf16>
    %cst_35 = arith.constant dense<0.000000e+00> : vector<8x128xf32>
    %69 = tpu.matmul %65, %68, %cst_35 {dimension_numbers = #tpu.dot_dimension_numbers<[1], [0], [0], [1], [0, 0, 1, 1], [], []>} : vector<8x128xbf16>, vector<128x128xbf16>, vector<8x128xf32> -> vector<8x128xf32>
    %70 = vector.broadcast %66 : vector<1x128xf32> to vector<8x128xf32>
    %71 = arith.addf %69, %70 : vector<8x128xf32>
    %cst_36 = arith.constant 0.000000e+00 : f32
    %72 = vector.broadcast %cst_36 : f32 to vector<8x128xf32>
    %73 = arith.cmpf ogt, %71, %72 : vector<8x128xf32>
    %74 = math.exp %71 : vector<8x128xf32>
    %cst_37 = arith.constant 1.000000e+00 : f32
    %75 = vector.broadcast %cst_37 : f32 to vector<8x128xf32>
    %76 = arith.subf %74, %75 : vector<8x128xf32>
    %cst_38 = arith.constant 1.67326319 : f32
    %77 = vector.broadcast %cst_38 : f32 to vector<8x128xf32>
    %78 = arith.mulf %77, %76 : vector<8x128xf32>
    %79 = arith.select %73, %71, %78 : vector<8x128xi1>, vector<8x128xf32>
    %cst_39 = arith.constant 1.05070102 : f32
    %80 = vector.broadcast %cst_39 : f32 to vector<8x128xf32>
    %81 = arith.mulf %80, %79 : vector<8x128xf32>
    %c0_40 = arith.constant 0 : index
    %c640 = arith.constant 640 : index
    %82 = vector.load %arg6[%c0_40, %c640] : memref<1x768xf32, #tpu.memory_space<vmem>>, vector<1x128xf32>
    %83 = arith.truncf %81 : vector<8x128xf32> to vector<8x128xbf16>
    %c1_41 = arith.constant 1 : index
    %c0_42 = arith.constant 0 : index
    %c0_43 = arith.constant 0 : index
    %84 = vector.load %arg5[%c1_41, %c0_42, %c0_43] : memref<2x128x128xbf16, #tpu.memory_space<vmem>>, vector<1x128x128xbf16>
    %85 = vector.shape_cast %84 : vector<1x128x128xbf16> to vector<128x128xbf16>
    %cst_44 = arith.constant dense<0.000000e+00> : vector<8x128xf32>
    %86 = tpu.matmul %83, %85, %cst_44 {dimension_numbers = #tpu.dot_dimension_numbers<[1], [0], [0], [1], [0, 0, 1, 1], [], []>} : vector<8x128xbf16>, vector<128x128xbf16>, vector<8x128xf32> -> vector<8x128xf32>
    %87 = vector.broadcast %82 : vector<1x128xf32> to vector<8x128xf32>
    %88 = arith.addf %86, %87 : vector<8x128xf32>
    %89 = tpu.concatenate %16, %31, %61, %88 in 1 : vector<8x128xf32>, vector<8x128xf32>, vector<8x128xf32>, vector<8x128xf32> -> vector<8x512xf32>
    %c0_45 = arith.constant 0 : index
    %c0_46 = arith.constant 0 : index
    %90 = vector.load %arg9[%c0_45, %c0_46] : memref<8x512xf32, #tpu.memory_space<vmem>>, vector<8x512xf32>
    tpu.vector_store %arg9[%c0_45, %c0_46], %89 {strides = array<i32>} : memref<8x512xf32, #tpu.memory_space<vmem>>, vector<8x512xf32>,
    return
  }
  func.func @transform_0(%arg0: i32) -> (i32, i32) {
    %c0_i32 = arith.constant 0 : i32
    %c0_i32_0 = arith.constant 0 : i32
    return %arg0, %c0_i32 : i32, i32
  }
  func.func @transform_1(%arg0: i32) -> (i32, i32) {
    %c0_i32 = arith.constant 0 : i32
    %c0_i32_0 = arith.constant 0 : i32
    %c0_i32_1 = arith.constant 0 : i32
    return %c0_i32, %c0_i32_0 : i32, i32
  }
  func.func @transform_2(%arg0: i32) -> (i32, i32) {
    %c0_i32 = arith.constant 0 : i32
    %c0_i32_0 = arith.constant 0 : i32
    %c0_i32_1 = arith.constant 0 : i32
    return %c0_i32, %c0_i32_0 : i32, i32
  }
  func.func @transform_3(%arg0: i32) -> (i32, i32, i32) {
    %c0_i32 = arith.constant 0 : i32
    %c0_i32_0 = arith.constant 0 : i32
    %c0_i32_1 = arith.constant 0 : i32
    %c0_i32_2 = arith.constant 0 : i32
    return %c0_i32, %c0_i32_0, %c0_i32_1 : i32, i32, i32
  }
  func.func @transform_4(%arg0: i32) -> (i32, i32, i32) {
    %c0_i32 = arith.constant 0 : i32
    %c0_i32_0 = arith.constant 0 : i32
    %c0_i32_1 = arith.constant 0 : i32
    %c0_i32_2 = arith.constant 0 : i32
    return %c0_i32, %c0_i32_0, %c0_i32_1 : i32, i32, i32
  }
  func.func @transform_5(%arg0: i32) -> (i32, i32) {
    %c0_i32 = arith.constant 0 : i32
    %c0_i32_0 = arith.constant 0 : i32
    %c0_i32_1 = arith.constant 0 : i32
    return %c0_i32, %c0_i32_0 : i32, i32
  }
  func.func @transform_6(%arg0: i32) -> (i32, i32) {
    %c0_i32 = arith.constant 0 : i32
    %c0_i32_0 = arith.constant 0 : i32
    %c0_i32_1 = arith.constant 0 : i32
    return %c0_i32, %c0_i32_0 : i32, i32
  }
  func.func @transform_7(%arg0: i32) -> (i32, i32) {
    %c0_i32 = arith.constant 0 : i32
    %c0_i32_0 = arith.constant 0 : i32
    %c0_i32_1 = arith.constant 0 : i32
    return %c0_i32, %c0_i32_0 : i32, i32
  }
  func.func @transform_8(%arg0: i32) -> (i32, i32) {
    %c0_i32 = arith.constant 0 : i32
    %c0_i32_0 = arith.constant 0 : i32
    return %arg0, %c0_i32 : i32, i32
  }
}

</mosaic_0001>

<bundles_post_ra>
// kernel: stacked_bayesian_autoencoder_forward.2
= control target key start
LH: loop header
LB: loop body
LE: loop exit
PB: predicated region body
PF: predicated region fallthrough
CT: control target
= control target key end

     0   :  { %v237_v0 = vmov 0.0   ;;  %vm238_vm0 = vmmov 0   ;;  %vm42_vm1 = vcmask 261120   ;;  %vm88_vm2 = vcmask 64512   ;;  %s279_s1 = inlined_call_operand.vmem [shape: bf16[32,128], index: 1, kind: input, shape index: {}]   ;;  %s280_s0 = inlined_call_operand.vmem [shape: f32[8,32], index: 0, kind: input, shape index: {}]   ;;  %s281_s2 = inlined_call_operand.vmem [shape: f32[2,128], index: 2, kind: input, shape index: {}]   ;;  %s282_s3 = inlined_call_operand.vmem [shape: f32[2,128], index: 3, kind: output, shape index: {}]  }
   0x1   :  { %221 = vmatprep.subr.bf16.mxu0 %v237_v0  ;;  %v233_v1 = vld [vmem:[%s279_s1 + $0x8] sm:$0xff]   ;;  %225 = vmatprep.mubr.msk.bf16.mxu0 %vm238_vm0, %v237_v0  ;;  %v234_v2 = vld [vmem:[%s279_s1] sm:$0xff]   ;;  %v239_v9 = vmov 1.0   ;;  %v19_v11 = vlaneseq  ;;  %v240_v12 = vmov 1966171168   ;;  %vm207_vm4 = vcmask 1040384  }
   0x2   :  { %156 = vmatprep.mubr.f32.mxu1 %v237_v0  ;;  %222 = vmatpush3.bf16.msra.mxu0 %v233_v1  ;;  %v24_v3 = vld [vmem:[%s280_s0] sm:$0xff]  ;;  %v167_v13 = vunpack.c.l.s4 %v240_v12 }
   0x3   :  { %223 = vmatprep.subr.bf16.mxu0 %v237_v0  ;;  %v25_v4 = vpack.c.bf16 %v24_v3, %v24_v3  ;;  %vm21_vm3 = vcmp.lt.s32.totalorder %v19_v11, 256  ;;  %v170_v15 = vshrl.u32 %v19_v11, 7  ;;  %v197_v32 = vld [vmem:[%s281_s2] sm:$0x1]  ;;  %v201_v35 = vld [vmem:[%s281_s2 + $0x1] sm:$0x1] }
   0x4   :  { %23 = vst.msk [vmem:[#allocation2] sm:$0x3] %vm21_vm3, %v237_v0  ;;  %v168_v14 = vunpack.c.0.s8 %v167_v13 }
   0x6   :  { %224 = vmatpush3.bf16.msra.mxu0 %v234_v2  ;;  %v171_v17 = vsub.s32 %v168_v14, %v170_v15 }
   0x9   :  { %226 = vmatmul.mubr.msk.bf16.vlgmr.msra.gmra.mxu0 %vm42_vm1, %v25_v4 }
   0xb   :  { %v87_v21 = vld [vmem:[#allocation2] sm:$0x3] }
  0xc9   :  { %v80_v5 = vpop.f32.mrf.mxu0 }
  0xca   :  { %v86_v6 = vmul.f32 %v80_v5, %v80_v5 }
  0xcb   :  { %v227_v7 = vpop.f32.mrf.mxu0 }
  0xcc   :  { %122 = vmatprep.subr.mxu1 %v86_v6 }
  0xcd   :  { %v83_v8 = vpop.f32.mrf.mxu0  ;;  %123 = vmatpush1.msra.mxu1 %v80_v5 }
  0xce   :  { %217 = vmatmul.mubr.msk.f32.vlgmr.msra.gmra.mxu1 %vm88_vm2, %v239_v9 }
  0xcf   :  { %v228_v10 = vpop.f32.mrf.mxu0 }
 0x18e   :  { %v158_v16 = vpop.f32.mrf.mxu1 }
 0x190   :  { %v160_v18 = vpop.f32.mrf.mxu1 }
 0x191   :  { %v165_v19 = vcombine.low %v158_v16, %v160_v18 }
 0x193   :  { %v172_v20 = vrot.slane %v165_v19, %v171_v17 }
 0x195   :  { %v179_v22 = vrot.slane %v172_v20, %v171_v17 }
 0x197   :  { %v181_v23 = vadd.f32 %v179_v22, %v87_v21 }
 0x199   :  { %186 = vst.msk [vmem:[#allocation2] sm:$0x3] %vm21_vm3, %v181_v23 }
 0x1a0   :  { %v190_v24 = vld [vmem:[#allocation2] sm:$0x1]  ;;  %v192_v25 = vld [vmem:[#allocation2 + $0x1] sm:$0x1] }
 0x1a1   :  { %v191_v26 = vmul.f32 0.125, %v190_v24  ;;  %v193_v27 = vmul.f32 0.125, %v192_v25 }
 0x1a3   :  { %v194_v28 = vmul.f32 %v191_v26, %v191_v26 }
 0x1a5   :  { %v195_v29 = vsub.f32 %v193_v27, %v194_v28 }
 0x1a7   :  { %v196_v30 = vmax.f32 %v195_v29, 0.0 }
 0x1a9   :  { %v198_v31 = vadd.f32 0.001, %v196_v30 }
 0x1ab   :  { %235 = vrsqrt.f32 %v198_v31 }
 0x1b8   :  { %v236_v33 = vpop.eup %235 }
 0x1b9   :  { %v200_v34 = vmul.f32 %v236_v33, %v197_v32 }
 0x1bb   :  { %v202_v36 = vmul.f32 %v200_v34, %v191_v26 }
 0x1bd   :  { %v203_v37 = vsub.f32 %v201_v35, %v202_v36 }
 0x1bf   :  { %v205_v38 = vrot.slane %v203_v37, 7 }
 0x1c1   :  { %v208_v39 = vsel %vm207_vm4, %v200_v34, %v205_v38 }
 0x1c2   :  { %209 = vst [vmem:[%s282_s3] sm:$0x3] %v208_v39 }

// kernel: stacked_bayesian_autoencoder_forward.3
= control target key start
LH: loop header
LB: loop body
LE: loop exit
PB: predicated region body
PF: predicated region fallthrough
CT: control target
= control target key end

     0   :  { %13 = vsyncpa [#allocation3], 0  ;;  %s1298_s0 = inlined_call_operand.vmem [shape: f32[8,32], index: 0, kind: input, shape index: {}]   ;;  %s1299_s1 = inlined_call_operand.vmem [shape: bf16[32,128], index: 1, kind: input, shape index: {}]   ;;  %s1300_s2 = inlined_call_operand.hbm [shape: bf16[128,256], index: 2, kind: input, shape index: {}]   ;;  %s1301_s3 = inlined_call_operand.hbm [shape: bf16[2,128,128], index: 3, kind: input, shape index: {}]   ;;  %s1302_s4 = inlined_call_operand.hbm [shape: bf16[2,128,128], index: 4, kind: input, shape index: {}]   ;;  %s1303_s5 = inlined_call_operand.vmem [shape: f32[1,768], index: 5, kind: input, shape index: {}]   ;;  %s1304_s6 = inlined_call_operand.vmem [shape: f32[1,256], index: 6, kind: input, shape index: {}]   ;;  %s1305_s7 = inlined_call_operand.vmem [shape: f32[2,128], index: 7, kind: input, shape index: {}]   ;;  %s1306_s8 = inlined_call_operand.vmem [shape: f32[8,512], index: 8, kind: output, shape index: {}]  }
   0x1   :  { %14 = vsyncpa [#allocation5], 0  ;;  %s1137_s27 = smov [#allocation4]  }
   0x2   :  { %s36_s28 = sshll.u32 %s1137_s27, 4  ;;  %s37_s28 = int_to_ptr.vmem [resolvable:$true] %s36_s28 }
   0x3   :  { %s1081_s29 = scalar_lea.vmem %s37_s28, 2048  ;;  %p1086_p1 = scmp.lt.s32.totalorder %s37_s28, %s37_s28 }
   0x4   :  { %p1082_p0 = scmp.ne.s32.totalorder %s37_s28, %s1081_s29  ;;  %p1087_p2 = scmp.lt.s32.totalorder %s1081_s29, %s1081_s29 }
   0x6   :  { %p1088_p3 = por %p1087_p2, %p1086_p1 }
   0x8   :  { %p1089_p4 = pnand %p1088_p3, %p1082_p0 }
   0xa   :  { %1092 = shalt.err (!%p1089_p4)
}
   0xb   :  { %s1138_s30 = smov 64   ;;  %s1139_s9 = smov 4  }
   0xc   :  { %42 = dma.hbm_to_vmem [thread:$0]  %s1301_s3, 2048, %s37_s28, [#allocation5], %s1138_s30, %s1138_s30, %s1139_s9  }
   0xd   :  { %s1140_s12 = smov [#allocation2]  }
   0xe   :  { %s24_s13 = sshll.u32 %s1140_s12, 4  ;;  %s25_s13 = int_to_ptr.vmem [resolvable:$true] %s24_s13 }
   0xf   :  { %s1101_s14 = scalar_lea.vmem %s25_s13, 2048  ;;  %p1106_p6 = scmp.lt.s32.totalorder %s25_s13, %s25_s13 }
  0x10   :  { %p1102_p5 = scmp.ne.s32.totalorder %s25_s13, %s1101_s14  ;;  %p1107_p7 = scmp.lt.s32.totalorder %s1101_s14, %s1101_s14 }
  0x12   :  { %p1108_p8 = por %p1107_p7, %p1106_p6 }
  0x14   :  { %p1109_p9 = pnand %p1108_p8, %p1102_p5 }
  0x16   :  { %1112 = shalt.err (!%p1109_p9)
}
  0x17   :  { %s1141_s15 = smov 128   ;;  %s1142_s16 = smov 8  }
  0x18   :  { %30 = dma.hbm_to_vmem [thread:$0]  %s1300_s2, 2048, %s25_s13, [#allocation3], %s1141_s15, %s1141_s15, %s1142_s16  }
  0x19   :  { %s1143_s19 = smov [#allocation6]  }
  0x1a   :  { %s48_s20 = sshll.u32 %s1143_s19, 4  ;;  %s49_s20 = int_to_ptr.vmem [resolvable:$true] %s48_s20 }
  0x1b   :  { %s1121_s3 = scalar_lea.vmem %s49_s20, 2048  ;;  %p1126_p11 = scmp.lt.s32.totalorder %s49_s20, %s49_s20 }
  0x1c   :  { %p1122_p10 = scmp.ne.s32.totalorder %s49_s20, %s1121_s3  ;;  %p1127_p12 = scmp.lt.s32.totalorder %s1121_s3, %s1121_s3 }
  0x1e   :  { %p1128_p13 = por %p1127_p12, %p1126_p11 }
  0x20   :  { %p1129_p0 = pnand %p1128_p13, %p1122_p10 }
  0x22   :  { %1132 = shalt.err (!%p1129_p0)
}
  0x23   :  { %54 = dma.hbm_to_vmem [thread:$0]  %s1302_s4, 2048, %s49_s20, [#allocation5], %s1138_s30, %s1138_s30, %s1139_s9  }
  0x24   :  { %1133 = dma.done.wait [#allocation3], 2048  }
  0x25   :  { %1134 = vsyncadd [#allocation3], 4294965248 }
  0x26   :  { %1135 = dma.done.wait [#allocation5], 4096  }
  0x27   :  { %1136 = vsyncadd [#allocation5], 4294963200  ;;  %v1144_v0 = vmov 0.0   ;;  %vm1145_vm0 = vmmov 0   ;;  %v1005_v1 = vld [vmem:[%s1299_s1 + $0x8] sm:$0xff]   ;;  %v1006_v2 = vld [vmem:[%s1299_s1] sm:$0xff]   ;;  %v164_v31 = vlaneseq }
  0x28   :  { %907 = vmatprep.subr.bf16.mxu0 %v1144_v0  ;;  %911 = vmatprep.mubr.msk.bf16.mxu0 %vm1145_vm0, %v1144_v0  ;;  %v71_v3 = vld [vmem:[%s1298_s0] sm:$0xff]  ;;  %v1007_v4 = vld [vmem:[#allocation2 + $0x74] ss:$8 sps:$4 sm:$0xff]   ;;  %v1009_v5 = vld [vmem:[#allocation2 + $0x70] ss:$8 sps:$4 sm:$0xff]   ;;  %vm89_vm1 = vcmask 261120  }
  0x29   :  { %908 = vmatpush3.bf16.msra.mxu0 %v1005_v1  ;;  %v1010_v6 = vld [vmem:[#allocation2 + $0x64] ss:$8 sps:$4 sm:$0xff]   ;;  %v72_v7 = vpack.c.bf16 %v71_v3, %v71_v3  ;;  %254 = vmatprep.subr.bf16.mxu1 %v1007_v4  ;;  %v1012_v8 = vld [vmem:[#allocation2 + $0x60] ss:$8 sps:$4 sm:$0xff]   ;;  %v1013_v9 = vld [vmem:[#allocation2 + $0x54] ss:$8 sps:$4 sm:$0xff]  }
  0x2a   :  { %909 = vmatprep.subr.bf16.mxu0 %v1144_v0  ;;  %255 = vmatpush1.bf16.msra.mxu1 %v1009_v5  ;;  %v1015_v10 = vld [vmem:[#allocation2 + $0x50] ss:$8 sps:$4 sm:$0xff]   ;;  %v1016_v11 = vld [vmem:[#allocation2 + $0x44] ss:$8 sps:$4 sm:$0xff]   ;;  %v1018_v12 = vld [vmem:[#allocation2 + $0x40] ss:$8 sps:$4 sm:$0xff]  }
  0x2b   :  { %256 = vmatprep.subr.bf16.mxu1 %v1010_v6  ;;  %v1019_v13 = vld [vmem:[#allocation2 + $0x34] ss:$8 sps:$4 sm:$0xff]   ;;  %v1021_v14 = vld [vmem:[#allocation2 + $0x30] ss:$8 sps:$4 sm:$0xff]   ;;  %v1022_v15 = vld [vmem:[#allocation2 + $0x24] ss:$8 sps:$4 sm:$0xff]  }
  0x2c   :  { %v1024_v16 = vld [vmem:[#allocation2 + $0x20] ss:$8 sps:$4 sm:$0xff]   ;;  %v1025_v17 = vld [vmem:[#allocation2 + $0x14] ss:$8 sps:$4 sm:$0xff]   ;;  %v1027_v18 = vld [vmem:[#allocation2 + $0x10] ss:$8 sps:$4 sm:$0xff]  }
  0x2d   :  { %910 = vmatpush3.bf16.msra.mxu0 %v1006_v2  ;;  %v1028_v19 = vld [vmem:[#allocation2 + $0x4] ss:$8 sps:$4 sm:$0xff]   ;;  %v1030_v20 = vld [vmem:[#allocation2] ss:$8 sps:$4 sm:$0xff]   ;;  %v1146_v21 = vmov 0   ;;  %v165_v32 = vshrl.u32 %v164_v31, 7 }
  0x2e   :  { %915 = vmatprep.subr.bf16.mxu0 %v1144_v0  ;;  %257 = vmatpush1.bf16.msra.mxu1 %v1012_v8  ;;  %v810_v22 = vld [vmem:[%s1305_s7] ss:$0 sm:$0xff]  ;;  %v811_v24 = vld [vmem:[%s1305_s7 + $0x1] ss:$0 sm:$0xff]  ;;  %v296_v37 = vand.u32 127, %v164_v31  ;;  %v1031_v50 = vld [vmem:[#allocation4 + $0x38] sm:$0xff]  }
  0x2f   :  { %258 = vmatprep.subr.bf16.mxu1 %v1013_v9  ;;  %286 = vmatprep.mubr.bf16.mxu1 %v1146_v21  ;;  %v166_v33 = vsub.s32 0, %v165_v32  ;;  %v162_v34 = vld [vmem:[%s1303_s5] sm:$0x3]  ;;  %v170_v35 = vsub.s32 1, %v165_v32  ;;  %v1032_v51 = vld [vmem:[#allocation4 + $0x30] sm:$0xff]   ;;  %v1033_v52 = vld [vmem:[#allocation4 + $0x28] sm:$0xff]  }
  0x30   :  { %912 = vmatmul.mubr.msk.bf16.vlgmr.msra.gmra.mxu0 %vm89_vm1, %v72_v7  ;;  %vm297_vm2 = vcmp.lt.s32.totalorder %v296_v37, 16  ;;  %v1034_v53 = vld [vmem:[#allocation4 + $0x20] sm:$0xff]   ;;  %v1035_v54 = vld [vmem:[#allocation4 + $0x18] sm:$0xff]   ;;  %v1036_v55 = vld [vmem:[#allocation4 + $0x10] sm:$0xff]  }
  0x31   :  { %931 = vmatprep.mubr.msk.bf16.mxu0 %vm1145_vm0, %v1144_v0  ;;  %v167_v36 = vrot.slane %v162_v34, %v166_v33  ;;  %v171_v38 = vrot.slane %v162_v34, %v170_v35  ;;  %916 = vmatpush3.bf16.msra.mxu0 %v1031_v50  ;;  %v1037_v56 = vld [vmem:[#allocation4 + $0x8] sm:$0xff]   ;;  %v1038_v57 = vld [vmem:[#allocation4] sm:$0xff]   ;;  %v1047_v58 = vld [vmem:[#allocation6 + $0x38] sm:$0xff]  }
  0x32   :  { %259 = vmatpush1.bf16.msra.mxu1 %v1015_v10  ;;  %917 = vmatprep.subr.bf16.mxu0 %v1144_v0  ;;  %v828_v2 = vld [vmem:[%s1304_s6] ss:$0 sm:$0xff]  ;;  %v1039_v7 = vld [vmem:[#allocation4 + $0x78] sm:$0xff]   ;;  %v1040_v9 = vld [vmem:[#allocation4 + $0x70] sm:$0xff]  }
  0x33   :  { %260 = vmatprep.subr.bf16.mxu1 %v1016_v11  ;;  %v1041_v10 = vld [vmem:[#allocation4 + $0x68] sm:$0xff]   ;;  %v1042_v11 = vld [vmem:[#allocation4 + $0x60] sm:$0xff]  }
  0x34   :  { %v1049_v21 = vld [vmem:[#allocation6 + $0x28] sm:$0xff]  }
  0x35   :  { %918 = vmatpush3.bf16.msra.mxu0 %v1032_v51  ;;  %v1059_v51 = vld [vmem:[#allocation6 + $0x58] sm:$0xff]  }
  0x36   :  { %261 = vmatpush1.bf16.msra.mxu1 %v1018_v12  ;;  %919 = vmatprep.subr.bf16.mxu0 %v1144_v0  ;;  %v1043_v12 = vld [vmem:[#allocation4 + $0x58] sm:$0xff]  }
  0x37   :  { %262 = vmatprep.subr.bf16.mxu1 %v1019_v13  ;;  %v1044_v13 = vld [vmem:[#allocation4 + $0x50] sm:$0xff]  }
  0x39   :  { %920 = vmatpush3.bf16.msra.mxu0 %v1033_v52  ;;  %v1060_v52 = vld [vmem:[#allocation6 + $0x50] sm:$0xff]  }
  0x3a   :  { %263 = vmatpush1.bf16.msra.mxu1 %v1021_v14  ;;  %921 = vmatprep.subr.bf16.mxu0 %v1144_v0  ;;  %v848_v14 = vld [vmem:[%s1304_s6 + $0x1] ss:$0 sm:$0xff] }
  0x3b   :  { %264 = vmatprep.subr.bf16.mxu1 %v1022_v15  ;;  %v1045_v15 = vld [vmem:[#allocation4 + $0x48] sm:$0xff]  }
  0x3d   :  { %922 = vmatpush3.bf16.msra.mxu0 %v1034_v53  ;;  %v1061_v53 = vld [vmem:[#allocation6 + $0x48] sm:$0xff]  }
  0x3e   :  { %265 = vmatpush1.bf16.msra.mxu1 %v1024_v16  ;;  %923 = vmatprep.subr.bf16.mxu0 %v1144_v0 }
  0x3f   :  { %266 = vmatprep.subr.bf16.mxu1 %v1025_v17  ;;  %v1046_v17 = vld [vmem:[#allocation4 + $0x40] sm:$0xff]  }
  0x41   :  { %924 = vmatpush3.bf16.msra.mxu0 %v1035_v54 }
  0x42   :  { %267 = vmatpush1.bf16.msra.mxu1 %v1027_v18  ;;  %925 = vmatprep.subr.bf16.mxu0 %v1144_v0 }
  0x43   :  { %268 = vmatprep.subr.bf16.mxu1 %v1028_v19 }
  0x45   :  { %926 = vmatpush3.bf16.msra.mxu0 %v1036_v55 }
  0x46   :  { %269 = vmatpush1.bf16.msra.mxu1 %v1030_v20  ;;  %927 = vmatprep.subr.bf16.mxu0 %v1144_v0  ;;  %v1048_v20 = vld [vmem:[#allocation6 + $0x30] sm:$0xff]  }
  0x47   :  { %935 = vmatprep.subr.bf16.mxu1 %v1144_v0 }
  0x49   :  { %928 = vmatpush3.bf16.msra.mxu0 %v1037_v56 }
  0x4a   :  { %929 = vmatprep.subr.bf16.mxu0 %v1144_v0 }
  0x4d   :  { %930 = vmatpush3.bf16.msra.mxu0 %v1038_v57  ;;  %v1062_v57 = vld [vmem:[#allocation6 + $0x40] sm:$0xff]  }
  0x4e   :  { %955 = vmatprep.subr.bf16.mxu0 %v1144_v0 }
  0xf0   :  { %v127_v23 = vpop.f32.mrf.mxu0 }
  0xf1   :  { %v138_v25 = vmul.f32 %v810_v22, %v127_v23  ;;  %v1050_v22 = vld [vmem:[#allocation6 + $0x20] sm:$0xff]   ;;  %v1051_v23 = vld [vmem:[#allocation6 + $0x18] sm:$0xff]  }
  0xf2   :  { %v913_v26 = vpop.f32.mrf.mxu0 }
  0xf3   :  { %v144_v27 = vadd.f32 %v811_v24, %v138_v25  ;;  %v1052_v24 = vld [vmem:[#allocation6 + $0x10] sm:$0xff]   ;;  %v1053_v25 = vld [vmem:[#allocation6 + $0x8] sm:$0xff]   ;;  %v1054_v26 = vld [vmem:[#allocation6] sm:$0xff]  }
  0xf4   :  { %v130_v28 = vpop.f32.mrf.mxu0 }
  0xf5   :  { %v145_v29 = vpack.c.bf16 %v144_v27, %v144_v27  ;;  %v829_v27 = vld [vmem:[%s1303_s5 + $0x2] ss:$0 sm:$0xff] }
  0xf6   :  { %v914_v30 = vpop.f32.mrf.mxu0 }
  0xf7   :  { %287 = vmatmul.mubr.bf16.vlgmr.msra.gmra.mxu1 %v145_v29 }
  0xf8   :  { %951 = vmatprep.mubr.msk.bf16.mxu1 %vm1145_vm0, %v1144_v0  ;;  %936 = vmatpush3.bf16.msra.mxu1 %v1047_v58 }
  0xf9   :  { %937 = vmatprep.subr.bf16.mxu1 %v1144_v0 }
  0xfc   :  { %938 = vmatpush3.bf16.msra.mxu1 %v1048_v20 }
  0xfd   :  { %939 = vmatprep.subr.bf16.mxu1 %v1144_v0 }
 0x100   :  { %940 = vmatpush3.bf16.msra.mxu1 %v1049_v21 }
 0x101   :  { %941 = vmatprep.subr.bf16.mxu1 %v1144_v0 }
 0x104   :  { %942 = vmatpush3.bf16.msra.mxu1 %v1050_v22 }
 0x105   :  { %943 = vmatprep.subr.bf16.mxu1 %v1144_v0 }
 0x108   :  { %944 = vmatpush3.bf16.msra.mxu1 %v1051_v23 }
 0x109   :  { %945 = vmatprep.subr.bf16.mxu1 %v1144_v0 }
 0x10c   :  { %946 = vmatpush3.bf16.msra.mxu1 %v1052_v24 }
 0x10d   :  { %947 = vmatprep.subr.bf16.mxu1 %v1144_v0 }
 0x110   :  { %948 = vmatpush3.bf16.msra.mxu1 %v1053_v25 }
 0x111   :  { %949 = vmatprep.subr.bf16.mxu1 %v1144_v0 }
 0x114   :  { %950 = vmatpush3.bf16.msra.mxu1 %v1054_v26 }
 0x115   :  { %975 = vmatprep.subr.bf16.mxu1 %v1144_v0 }
 0x1b7   :  { %v288_v39 = vpop.f32.mrf.mxu1 }
 0x1b8   :  { %v1229_v40 = vadd.f32 %v288_v39, %v167_v36  ;;  %v1055_v39 = vld [vmem:[#allocation6 + $0x78] sm:$0xff]  }
 0x1b9   :  { %v290_v41 = vpop.f32.mrf.mxu1 }
 0x1ba   :  { %797 = vst [vmem:[%s1306_s8] sm:$0xff] %v1229_v40  ;;  %v291_v42 = vadd.f32 %v290_v41, %v171_v38  ;;  %v1056_v41 = vld [vmem:[#allocation6 + $0x70] sm:$0xff]  }
 0x1bb   :  { %v292_v43 = vpop.f32.mrf.mxu1 }
 0x1bc   :  { %v298_v44 = vsel %vm297_vm2, %v291_v42, -1e+30  ;;  %v849_v42 = vld [vmem:[%s1303_s5 + $0x3] ss:$0 sm:$0xff] }
 0x1bd   :  { %v293_v45 = vpop.f32.mrf.mxu1  ;;  %299 = vmax.xlane.f32.xlu0 %v298_v44 }
 0x1be   :  { %v1057_v45 = vld [vmem:[#allocation6 + $0x68] sm:$0xff]  }
 0x246   :  { %v300_v46 = vpop.xlane.xlu0 %299 }
 0x247   :  { %v301_v47 = vsub.f32 %v298_v44, %v300_v46 }
 0x249   :  { %v302_v48 = vmul.f32 1.442695, %v301_v47 }
 0x24b   :  { %1063 = vpow2.f32 %v302_v48 }
 0x258   :  { %v1064_v49 = vpop.eup %1063 }
 0x259   :  { %304 = vadd.xlane.f32.xlu0 %v1064_v49 }
 0x2e2   :  { %v305_v59 = vpop.xlane.xlu0 %304 }
 0x2e3   :  { %1065 = vrcp.f32 %v305_v59 }
 0x2f0   :  { %v1066_v60 = vpop.eup %1065 }
 0x2f1   :  { %v307_v61 = vmul.f32 %v1066_v60, %v1064_v49  ;;  %v1058_v49 = vld [vmem:[#allocation6 + $0x60] sm:$0xff]  }
 0x2f3   :  { %798 = vst [vmem:[%s1306_s8 + $0x8] sm:$0xff] %v307_v61  ;;  %1067 = vrsqrt.f32 %v307_v61  ;;  %vm310_vm3 = vcmp.eq.f32.partialorder %v307_v61, inf  ;;  %v313_v1 = vand.u32 2147483648, %v307_v61  ;;  %vm312_vm4 = vcmp.eq.f32.partialorder %v307_v61, 0.0 }
 0x300   :  { %v1068_v62 = vpop.eup %1067 }
 0x301   :  { %v309_v63 = vmul.f32 %v1068_v62, %v307_v61 }
 0x303   :  { %v311_v3 = vsel %vm310_vm3, %v307_v61, %v309_v63  ;;  %v839_v61 = vld [vmem:[%s1303_s5 + $0x4] ss:$0 sm:$0xff] }
 0x304   :  { %v314_v4 = vsel %vm312_vm4, %v313_v1, %v311_v3 }
 0x305   :  { %v323_v5 = vmul.f32 %v828_v2, %v314_v4  ;;  %v562_v16 = vmul.f32 %v848_v14, %v314_v4 }
 0x307   :  { %v324_v6 = vadd.f32 %v323_v5, %v1229_v40  ;;  %v563_v18 = vadd.f32 %v562_v16, %v1229_v40 }
 0x309   :  { %v325_v8 = vpack.c.bf16 %v324_v6, %v324_v6  ;;  %v564_v19 = vpack.c.bf16 %v563_v18, %v563_v18 }
 0x30b   :  { %932 = vmatmul.mubr.bf16.vlgmr.msra.gmra.mxu0 %v325_v8 }
 0x30c   :  { %956 = vmatpush3.bf16.msra.mxu0 %v1039_v7  ;;  %971 = vmatprep.mubr.msk.bf16.mxu0 %vm1145_vm0, %v1144_v0 }
 0x30d   :  { %957 = vmatprep.subr.bf16.mxu0 %v1144_v0 }
 0x310   :  { %958 = vmatpush3.bf16.msra.mxu0 %v1040_v9 }
 0x311   :  { %959 = vmatprep.subr.bf16.mxu0 %v1144_v0 }
 0x314   :  { %960 = vmatpush3.bf16.msra.mxu0 %v1041_v10 }
 0x315   :  { %961 = vmatprep.subr.bf16.mxu0 %v1144_v0 }
 0x318   :  { %962 = vmatpush3.bf16.msra.mxu0 %v1042_v11 }
 0x319   :  { %963 = vmatprep.subr.bf16.mxu0 %v1144_v0 }
 0x31c   :  { %964 = vmatpush3.bf16.msra.mxu0 %v1043_v12 }
 0x31d   :  { %965 = vmatprep.subr.bf16.mxu0 %v1144_v0 }
 0x320   :  { %966 = vmatpush3.bf16.msra.mxu0 %v1044_v13 }
 0x321   :  { %967 = vmatprep.subr.bf16.mxu0 %v1144_v0 }
 0x324   :  { %968 = vmatpush3.bf16.msra.mxu0 %v1045_v15 }
 0x325   :  { %969 = vmatprep.subr.bf16.mxu0 %v1144_v0 }
 0x328   :  { %970 = vmatpush3.bf16.msra.mxu0 %v1046_v17 }
 0x32b   :  { %972 = vmatmul.mubr.bf16.vlgmr.msra.gmra.mxu0 %v564_v19 }
 0x3cb   :  { %v431_v28 = vpop.f32.mrf.mxu0 }
 0x3cc   :  { %v432_v29 = vadd.f32 %v829_v27, %v431_v28 }
 0x3cd   :  { %v933_v30 = vpop.f32.mrf.mxu0 }
 0x3ce   :  { %v438_v31 = vmul.f32 1.442695, %v432_v29  ;;  %vm437_vm5 = vcmp.gt.f32.partialorder %v432_v29, 0.0 }
 0x3cf   :  { %v434_v32 = vpop.f32.mrf.mxu0 }
 0x3d0   :  { %1069 = vpow2.f32 %v438_v31 }
 0x3d1   :  { %v934_v33 = vpop.f32.mrf.mxu0 }
 0x3dd   :  { %v1070_v34 = vpop.eup %1069 }
 0x3de   :  { %v838_v35 = vadd.f32 -1.0, %v1070_v34 }
 0x3e0   :  { %v441_v36 = vmul.f32 1.6732632, %v838_v35 }
 0x3e2   :  { %v442_v37 = vsel %vm437_vm5, %v432_v29, %v441_v36 }
 0x3e3   :  { %v443_v38 = vmul.f32 1.050701, %v442_v37 }
 0x3e5   :  { %v445_v40 = vpack.c.bf16 %v443_v38, %v443_v38 }
 0x3e7   :  { %952 = vmatmul.mubr.bf16.vlgmr.msra.gmra.mxu1 %v445_v40 }
 0x3e8   :  { %976 = vmatpush3.bf16.msra.mxu1 %v1055_v39  ;;  %991 = vmatprep.mubr.msk.bf16.mxu1 %vm1145_vm0, %v1144_v0 }
 0x3e9   :  { %977 = vmatprep.subr.bf16.mxu1 %v1144_v0 }
 0x3eb   :  { %v671_v43 = vpop.f32.mrf.mxu0 }
 0x3ec   :  { %v672_v44 = vadd.f32 %v849_v42, %v671_v43  ;;  %978 = vmatpush3.bf16.msra.mxu1 %v1056_v41 }
 0x3ed   :  { %v973_v46 = vpop.f32.mrf.mxu0  ;;  %979 = vmatprep.subr.bf16.mxu1 %v1144_v0 }
 0x3ee   :  { %v678_v47 = vmul.f32 1.442695, %v672_v44  ;;  %vm677_vm6 = vcmp.gt.f32.partialorder %v672_v44, 0.0 }
 0x3ef   :  { %v674_v48 = vpop.f32.mrf.mxu0 }
 0x3f0   :  { %1071 = vpow2.f32 %v678_v47  ;;  %980 = vmatpush3.bf16.msra.mxu1 %v1057_v45 }
 0x3f1   :  { %v974_v50 = vpop.f32.mrf.mxu0  ;;  %981 = vmatprep.subr.bf16.mxu1 %v1144_v0 }
 0x3f4   :  { %982 = vmatpush3.bf16.msra.mxu1 %v1058_v49 }
 0x3f5   :  { %983 = vmatprep.subr.bf16.mxu1 %v1144_v0 }
 0x3f8   :  { %984 = vmatpush3.bf16.msra.mxu1 %v1059_v51 }
 0x3f9   :  { %985 = vmatprep.subr.bf16.mxu1 %v1144_v0 }
 0x3fc   :  { %986 = vmatpush3.bf16.msra.mxu1 %v1060_v52 }
 0x3fd   :  { %v1072_v54 = vpop.eup %1071  ;;  %987 = vmatprep.subr.bf16.mxu1 %v1144_v0 }
 0x3fe   :  { %v858_v55 = vadd.f32 -1.0, %v1072_v54 }
 0x400   :  { %v681_v56 = vmul.f32 1.6732632, %v858_v55  ;;  %988 = vmatpush3.bf16.msra.mxu1 %v1061_v53 }
 0x401   :  { %989 = vmatprep.subr.bf16.mxu1 %v1144_v0  ;;  %v859_v0 = vld [vmem:[%s1303_s5 + $0x5] ss:$0 sm:$0xff] }
 0x402   :  { %v682_v58 = vsel %vm677_vm6, %v672_v44, %v681_v56 }
 0x403   :  { %v683_v59 = vmul.f32 1.050701, %v682_v58 }
 0x404   :  { %990 = vmatpush3.bf16.msra.mxu1 %v1062_v57 }
 0x405   :  { %v685_v60 = vpack.c.bf16 %v683_v59, %v683_v59 }
 0x407   :  { %992 = vmatmul.mubr.bf16.vlgmr.msra.gmra.mxu1 %v685_v60 }
 0x4a7   :  { %v550_v62 = vpop.f32.mrf.mxu1 }
 0x4a8   :  { %v551_v63 = vadd.f32 %v839_v61, %v550_v62 }
 0x4a9   :  { %v953_v1 = vpop.f32.mrf.mxu1 }
 0x4aa   :  { %799 = vst [vmem:[%s1306_s8 + $0x10] sm:$0xff] %v551_v63 }
 0x4ab   :  { %v553_v2 = vpop.f32.mrf.mxu1 }
 0x4ad   :  { %v954_v3 = vpop.f32.mrf.mxu1 }
 0x4c7   :  { %v791_v4 = vpop.f32.mrf.mxu1 }
 0x4c8   :  { %v792_v5 = vadd.f32 %v859_v0, %v791_v4 }
 0x4c9   :  { %v993_v6 = vpop.f32.mrf.mxu1 }
 0x4ca   :  { %800 = vst [vmem:[%s1306_s8 + $0x18] sm:$0xff] %v792_v5 }
 0x4cb   :  { %v794_v7 = vpop.f32.mrf.mxu1 }
 0x4cd   :  { %v994_v8 = vpop.f32.mrf.mxu1 }
 0x4ce   :  { %805 = vsyncpa [#allocation3], 1 }
 0x4cf   :  { %806 = vsyncpa [#allocation5], 1 }

</bundles_post_ra>
